<compile_context>
chip_gen: v5e
topology: v5e:2x2
jax: 0.10.0
libtpu: 0.0.40
codegen_flags: <defaults>
</compile_context>

<pallas_src>
import jax
import jax.numpy as jnp
from jax.experimental import pallas as pl
from jax.experimental.pallas import tpu as pltpu

IN_DIM = 100
HID_DIM = 400
OUT_DIM = 100


def _mlp_kernel(x_ref, w1_ref, b1_ref, w2_ref, b2_ref, o_ref):
    # x_ref: (TM, 100)  w1_ref: (100, 400)  b1_ref: (1, 400)
    # w2_ref: (400, 100) b2_ref: (1, 100)   o_ref: (TM, 100)
    h = jnp.dot(x_ref[...], w1_ref[...], preferred_element_type=jnp.float32)
    h = jnp.maximum(h + b1_ref[...], 0.0)                       # bias + ReLU (VPU)
    out = jnp.dot(h, w2_ref[...], preferred_element_type=jnp.float32)
    out = out + b2_ref[...]
    o_ref[...] = out.astype(o_ref.dtype)


def latent_predictor_disc_what(data, w1, b1, w2, b2, *, block_b=None):
    """data: [B, 100] f32.  Returns (z_where_mean [B,50], z_where_std [B,50])."""
    B, F = data.shape
    assert F == IN_DIM
    assert w1.shape == (IN_DIM, HID_DIM) and b1.shape == (1, HID_DIM)
    assert w2.shape == (HID_DIM, OUT_DIM) and b2.shape == (1, OUT_DIM)

    if block_b is None:
        # Batch tile: multiple of 8 (sublane) when tiling, otherwise the full
        # (possibly small / non-multiple-of-8) batch as a single block.
        block_b = 256 if B > 256 else B

    grid = (pl.cdiv(B, block_b),)

    out = pl.pallas_call(
        _mlp_kernel,
        out_shape=jax.ShapeDtypeStruct((B, OUT_DIM), jnp.float32),
        grid=grid,
        in_specs=[
            pl.BlockSpec((block_b, IN_DIM), lambda i: (i, 0)),    # batch-tiled input
            pl.BlockSpec((IN_DIM, HID_DIM), lambda i: (0, 0)),    # W1 (resident)
            pl.BlockSpec((1, HID_DIM), lambda i: (0, 0)),         # b1
            pl.BlockSpec((HID_DIM, OUT_DIM), lambda i: (0, 0)),   # W2 (resident)
            pl.BlockSpec((1, OUT_DIM), lambda i: (0, 0)),         # b2
        ],
        out_specs=pl.BlockSpec((block_b, OUT_DIM), lambda i: (i, 0)),
        compiler_params=pltpu.CompilerParams(
            dimension_semantics=("parallel",)                     # megacore on v7x
        ),
    )(data, w1, b1, w2, b2)

    # Slicing the lane-dense [B,100] slab in the wrapper keeps the kernel's
    # store path unmasked; the split itself is a trivial XLA slice.
    z_where_mean = out[:, 0:50]
    z_where_std = out[:, 50:100]
    return z_where_mean, z_where_std


def init_params(key):
    """Deterministic init mimicking nn.Linear's uniform(-1/sqrt(fan_in), +)."""
    k1w, k1b, k2w, k2b = jax.random.split(key, 4)
    bound1 = 1.0 / jnp.sqrt(jnp.float32(IN_DIM))
    bound2 = 1.0 / jnp.sqrt(jnp.float32(HID_DIM))
    # Stored transposed vs. PyTorch ([out,in] -> [in,out]) so the kernel does x @ W.
    w1 = jax.random.uniform(k1w, (IN_DIM, HID_DIM), jnp.float32, -bound1, bound1)
    b1 = jax.random.uniform(k1b, (1, HID_DIM), jnp.float32, -bound1, bound1)
    w2 = jax.random.uniform(k2w, (HID_DIM, OUT_DIM), jnp.float32, -bound2, bound2)
    b2 = jax.random.uniform(k2b, (1, OUT_DIM), jnp.float32, -bound2, bound2)
    return w1, b1, w2, b2


if __name__ == "__main__":
    key = jax.random.PRNGKey(0)
    k_x, k_p = jax.random.split(key)

    batch = 8
    data = jax.random.normal(k_x, (batch, IN_DIM), jnp.float32)
    w1, b1, w2, b2 = init_params(k_p)

    z_mean, z_std = latent_predictor_disc_what(data, w1, b1, w2, b2)
    (z_mean, z_std) = jax.block_until_ready((z_mean, z_std))

    # Pure-JAX reference (same math as the PyTorch module).
    h_ref = jnp.maximum(data @ w1 + b1, 0.0)
    out_ref = h_ref @ w2 + b2
    assert z_mean.shape == (batch, 50) and z_std.shape == (batch, 50)
    assert jnp.allclose(z_mean, out_ref[:, 0:50], atol=1e-5, rtol=1e-5)
    assert jnp.allclose(z_std, out_ref[:, 50:100], atol=1e-5, rtol=1e-5)

    print("KERNEL_OK")
</pallas_src>

<mosaic_0001>
module attributes {stable_mosaic.version = 11 : i64} {
  func.func @_mlp_kernel(%arg0: i32, %arg1: memref<8x100xf32, #tpu.memory_space<vmem>>, %arg2: memref<100x400xf32, #tpu.memory_space<vmem>>, %arg3: memref<1x400xf32, #tpu.memory_space<vmem>>, %arg4: memref<400x100xf32, #tpu.memory_space<vmem>>, %arg5: memref<1x100xf32, #tpu.memory_space<vmem>>, %arg6: memref<8x100xf32, #tpu.memory_space<vmem>>) attributes {dimension_semantics = [#tpu.dimension_semantics<parallel>], iteration_bounds = array<i64: 1>, scalar_prefetch = 0 : i64, scratch_operands = 0 : i64, tpu.core_type = #tpu.core_type<tc>, window_params = [{transform_indices = @transform_0, window_bounds = array<i64: 8, 100>}, {pipeline_mode = #tpu.pipeline_mode<synchronous>, transform_indices = @transform_1, window_bounds = array<i64: 100, 400>}, {pipeline_mode = #tpu.pipeline_mode<synchronous>, transform_indices = @transform_2, window_bounds = array<i64: 1, 400>}, {pipeline_mode = #tpu.pipeline_mode<synchronous>, transform_indices = @transform_3, window_bounds = array<i64: 400, 100>}, {pipeline_mode = #tpu.pipeline_mode<synchronous>, transform_indices = @transform_4, window_bounds = array<i64: 1, 100>}, {transform_indices = @transform_5, window_bounds = array<i64: 8, 100>}]} {
    %c0 = arith.constant 0 : index
    %c0_0 = arith.constant 0 : index
    %0 = vector.load %arg1[%c0, %c0_0] : memref<8x100xf32, #tpu.memory_space<vmem>>, vector<8x100xf32>
    %c0_1 = arith.constant 0 : index
    %c0_2 = arith.constant 0 : index
    %1 = vector.load %arg2[%c0_1, %c0_2] : memref<100x400xf32, #tpu.memory_space<vmem>>, vector<100x400xf32>
    %cst = arith.constant dense<0.000000e+00> : vector<8x400xf32>
    %2 = tpu.matmul %0, %1, %cst {dimension_numbers = #tpu.dot_dimension_numbers<[1], [0], [0], [1], [0, 0, 1, 1], [], []>} : vector<8x100xf32>, vector<100x400xf32>, vector<8x400xf32> -> vector<8x400xf32>
    %c0_3 = arith.constant 0 : index
    %c0_4 = arith.constant 0 : index
    %3 = vector.load %arg3[%c0_3, %c0_4] : memref<1x400xf32, #tpu.memory_space<vmem>>, vector<1x400xf32>
    %4 = vector.broadcast %3 : vector<1x400xf32> to vector<8x400xf32>
    %5 = arith.addf %2, %4 : vector<8x400xf32>
    %cst_5 = arith.constant 0.000000e+00 : f32
    %6 = vector.broadcast %cst_5 : f32 to vector<8x400xf32>
    %7 = arith.maximumf %5, %6 : vector<8x400xf32>
    %c0_6 = arith.constant 0 : index
    %c0_7 = arith.constant 0 : index
    %8 = vector.load %arg4[%c0_6, %c0_7] : memref<400x100xf32, #tpu.memory_space<vmem>>, vector<400x100xf32>
    %cst_8 = arith.constant dense<0.000000e+00> : vector<8x100xf32>
    %9 = tpu.matmul %7, %8, %cst_8 {dimension_numbers = #tpu.dot_dimension_numbers<[1], [0], [0], [1], [0, 0, 1, 1], [], []>} : vector<8x400xf32>, vector<400x100xf32>, vector<8x100xf32> -> vector<8x100xf32>
    %c0_9 = arith.constant 0 : index
    %c0_10 = arith.constant 0 : index
    %10 = vector.load %arg5[%c0_9, %c0_10] : memref<1x100xf32, #tpu.memory_space<vmem>>, vector<1x100xf32>
    %11 = vector.broadcast %10 : vector<1x100xf32> to vector<8x100xf32>
    %12 = arith.addf %9, %11 : vector<8x100xf32>
    %c0_11 = arith.constant 0 : index
    %c0_12 = arith.constant 0 : index
    %13 = vector.load %arg6[%c0_11, %c0_12] : memref<8x100xf32, #tpu.memory_space<vmem>>, vector<8x100xf32>
    tpu.vector_store %arg6[%c0_11, %c0_12], %12 {strides = array<i32>} : memref<8x100xf32, #tpu.memory_space<vmem>>, vector<8x100xf32>,
    return
  }
  func.func @transform_0(%arg0: i32) -> (i32, i32) {
    %c0_i32 = arith.constant 0 : i32
    %c0_i32_0 = arith.constant 0 : i32
    return %arg0, %c0_i32 : i32, i32
  }
  func.func @transform_1(%arg0: i32) -> (i32, i32) {
    %c0_i32 = arith.constant 0 : i32
    %c0_i32_0 = arith.constant 0 : i32
    %c0_i32_1 = arith.constant 0 : i32
    return %c0_i32, %c0_i32_0 : i32, i32
  }
  func.func @transform_2(%arg0: i32) -> (i32, i32) {
    %c0_i32 = arith.constant 0 : i32
    %c0_i32_0 = arith.constant 0 : i32
    %c0_i32_1 = arith.constant 0 : i32
    return %c0_i32, %c0_i32_0 : i32, i32
  }
  func.func @transform_3(%arg0: i32) -> (i32, i32) {
    %c0_i32 = arith.constant 0 : i32
    %c0_i32_0 = arith.constant 0 : i32
    %c0_i32_1 = arith.constant 0 : i32
    return %c0_i32, %c0_i32_0 : i32, i32
  }
  func.func @transform_4(%arg0: i32) -> (i32, i32) {
    %c0_i32 = arith.constant 0 : i32
    %c0_i32_0 = arith.constant 0 : i32
    %c0_i32_1 = arith.constant 0 : i32
    return %c0_i32, %c0_i32_0 : i32, i32
  }
  func.func @transform_5(%arg0: i32) -> (i32, i32) {
    %c0_i32 = arith.constant 0 : i32
    %c0_i32_0 = arith.constant 0 : i32
    return %arg0, %c0_i32 : i32, i32
  }
}

</mosaic_0001>

<bundles_post_ra>
// kernel: tpu_custom_call.1
= control target key start
LH: loop header
LB: loop body
LE: loop exit
PB: predicated region body
PF: predicated region fallthrough
CT: control target
= control target key end

     0   :  { %vm88_vm0 = vcmask 1043456   ;;  %vm84_vm1 = vcmask 818176   ;;  %s735_s0 = inlined_call_operand.vmem [shape: f32[8,100], index: 0, kind: input, shape index: {}]   ;;  %s736_s1 = inlined_call_operand.vmem [shape: f32[100,400], index: 1, kind: input, shape index: {}]   ;;  %s737_s2 = inlined_call_operand.vmem [shape: f32[1,400], index: 2, kind: input, shape index: {}]   ;;  %s738_s3 = inlined_call_operand.vmem [shape: f32[400,100], index: 3, kind: input, shape index: {}]   ;;  %s739_s4 = inlined_call_operand.vmem [shape: f32[1,100], index: 4, kind: input, shape index: {}]   ;;  %s740_s5 = inlined_call_operand.hbm [shape: f32[8,100], index: 5, kind: output, shape index: {}]  }
   0x1   :  { %v72_v0 = vld [vmem:[%s736_s1 + $0x190] sm:$0xf]  ;;  %v73_v2 = vld [vmem:[%s736_s1 + $0x198] sm:$0xf]  ;;  %v70_v6 = vld [vmem:[%s736_s1 + $0x180] sm:$0xf] }
   0x2   :  { %v68_v1 = vld [vmem:[%s736_s1 + $0x170] sm:$0xff]  ;;  %344 = vmatpush.msk.msra.mxu2 %vm88_vm0, %v72_v0  ;;  %346 = vmatpush.msk.msra.mxu3 %vm88_vm0, %v73_v2  ;;  %v69_v3 = vld [vmem:[%s736_s1 + $0x178] sm:$0xff]  ;;  %v66_v7 = vld [vmem:[%s736_s1 + $0x160] sm:$0xff] }
   0x3   :  { %v64_v4 = vld [vmem:[%s736_s1 + $0x150] sm:$0xff]  ;;  %v65_v5 = vld [vmem:[%s736_s1 + $0x158] sm:$0xff]  ;;  %v71_v8 = vld [vmem:[%s736_s1 + $0x188] sm:$0xf]  ;;  %340 = vmatpush.msk.msra.mxu0 %vm88_vm0, %v70_v6 }
   0x4   :  { %145 = vmatpush.msra.mxu2 %v68_v1  ;;  %165 = vmatpush.msra.mxu3 %v69_v3  ;;  %v60_v9 = vld [vmem:[%s736_s1 + $0x130] sm:$0xff]  ;;  %v61_v10 = vld [vmem:[%s736_s1 + $0x138] sm:$0xff]  ;;  %v62_v11 = vld [vmem:[%s736_s1 + $0x140] sm:$0xff] }
   0x5   :  { %342 = vmatpush.msk.msra.mxu1 %vm88_vm0, %v71_v8  ;;  %v67_v12 = vld [vmem:[%s736_s1 + $0x168] sm:$0xff]  ;;  %v56_v13 = vld [vmem:[%s736_s1 + $0x110] sm:$0xff]  ;;  %105 = vmatpush.msra.mxu0 %v66_v7  ;;  %v57_v14 = vld [vmem:[%s736_s1 + $0x118] sm:$0xff] }
   0x6   :  { %146 = vmatpush.msra.mxu2 %v64_v4  ;;  %166 = vmatpush.msra.mxu3 %v65_v5  ;;  %v63_v15 = vld [vmem:[%s736_s1 + $0x148] sm:$0xff]  ;;  %v58_v16 = vld [vmem:[%s736_s1 + $0x120] sm:$0xff]  ;;  %v52_v18 = vld [vmem:[%s736_s1 + $0xf0] sm:$0xff] }
   0x7   :  { %125 = vmatpush.msra.mxu1 %v67_v12  ;;  %v59_v17 = vld [vmem:[%s736_s1 + $0x128] sm:$0xff]  ;;  %106 = vmatpush.msra.mxu0 %v62_v11  ;;  %v53_v19 = vld [vmem:[%s736_s1 + $0xf8] sm:$0xff]  ;;  %v54_v20 = vld [vmem:[%s736_s1 + $0x100] sm:$0xff] }
   0x8   :  { %147 = vmatpush.msra.mxu2 %v60_v9  ;;  %167 = vmatpush.msra.mxu3 %v61_v10  ;;  %v55_v21 = vld [vmem:[%s736_s1 + $0x108] sm:$0xff]  ;;  %v48_v22 = vld [vmem:[%s736_s1 + $0xd0] sm:$0xff]  ;;  %v49_v23 = vld [vmem:[%s736_s1 + $0xd8] sm:$0xff] }
   0x9   :  { %126 = vmatpush.msra.mxu1 %v63_v15  ;;  %107 = vmatpush.msra.mxu0 %v58_v16  ;;  %v50_v24 = vld [vmem:[%s736_s1 + $0xe0] sm:$0xff]  ;;  %v51_v25 = vld [vmem:[%s736_s1 + $0xe8] sm:$0xff]  ;;  %v44_v26 = vld [vmem:[%s736_s1 + $0xb0] sm:$0xff] }
   0xa   :  { %148 = vmatpush.msra.mxu2 %v56_v13  ;;  %168 = vmatpush.msra.mxu3 %v57_v14  ;;  %v45_v27 = vld [vmem:[%s736_s1 + $0xb8] sm:$0xff]  ;;  %v46_v28 = vld [vmem:[%s736_s1 + $0xc0] sm:$0xff]  ;;  %v47_v29 = vld [vmem:[%s736_s1 + $0xc8] sm:$0xff] }
   0xb   :  { %127 = vmatpush.msra.mxu1 %v59_v17  ;;  %108 = vmatpush.msra.mxu0 %v54_v20  ;;  %v40_v30 = vld [vmem:[%s736_s1 + $0x90] sm:$0xff]  ;;  %v41_v31 = vld [vmem:[%s736_s1 + $0x98] sm:$0xff]  ;;  %v42_v32 = vld [vmem:[%s736_s1 + $0xa0] sm:$0xff] }
   0xc   :  { %149 = vmatpush.msra.mxu2 %v52_v18  ;;  %169 = vmatpush.msra.mxu3 %v53_v19  ;;  %v43_v33 = vld [vmem:[%s736_s1 + $0xa8] sm:$0xff]  ;;  %v36_v34 = vld [vmem:[%s736_s1 + $0x70] sm:$0xff]  ;;  %v37_v35 = vld [vmem:[%s736_s1 + $0x78] sm:$0xff] }
   0xd   :  { %128 = vmatpush.msra.mxu1 %v55_v21  ;;  %109 = vmatpush.msra.mxu0 %v50_v24  ;;  %v38_v36 = vld [vmem:[%s736_s1 + $0x80] sm:$0xff]  ;;  %v39_v37 = vld [vmem:[%s736_s1 + $0x88] sm:$0xff]  ;;  %v32_v38 = vld [vmem:[%s736_s1 + $0x50] sm:$0xff] }
   0xe   :  { %150 = vmatpush.msra.mxu2 %v48_v22  ;;  %170 = vmatpush.msra.mxu3 %v49_v23  ;;  %v33_v39 = vld [vmem:[%s736_s1 + $0x58] sm:$0xff]  ;;  %v34_v40 = vld [vmem:[%s736_s1 + $0x60] sm:$0xff]  ;;  %v35_v41 = vld [vmem:[%s736_s1 + $0x68] sm:$0xff] }
   0xf   :  { %129 = vmatpush.msra.mxu1 %v51_v25  ;;  %110 = vmatpush.msra.mxu0 %v46_v28  ;;  %v28_v42 = vld [vmem:[%s736_s1 + $0x30] sm:$0xff]  ;;  %v29_v43 = vld [vmem:[%s736_s1 + $0x38] sm:$0xff]  ;;  %v30_v44 = vld [vmem:[%s736_s1 + $0x40] sm:$0xff] }
  0x10   :  { %151 = vmatpush.msra.mxu2 %v44_v26  ;;  %171 = vmatpush.msra.mxu3 %v45_v27  ;;  %v31_v45 = vld [vmem:[%s736_s1 + $0x48] sm:$0xff]  ;;  %v24_v46 = vld [vmem:[%s736_s1 + $0x10] sm:$0xff]  ;;  %v25_v47 = vld [vmem:[%s736_s1 + $0x18] sm:$0xff] }
  0x11   :  { %130 = vmatpush.msra.mxu1 %v47_v29  ;;  %111 = vmatpush.msra.mxu0 %v42_v32  ;;  %v21_v48 = vld [vmem:[%s735_s0] sm:$0xff]  ;;  %v27_v50 = vld [vmem:[%s736_s1 + $0x28] sm:$0xff]  ;;  %v232_v51 = vld [vmem:[%s738_s3 + $0x178] sm:$0xff] }
  0x12   :  { %152 = vmatpush.msra.mxu2 %v40_v30  ;;  %172 = vmatpush.msra.mxu3 %v41_v31  ;;  %v26_v49 = vld [vmem:[%s736_s1 + $0x20] sm:$0xff]  ;;  %v23_v53 = vld [vmem:[%s736_s1 + $0x8] sm:$0xff]  ;;  %v200_v54 = vld [vmem:[%s738_s3 + $0x78] sm:$0xff] }
  0x13   :  { %131 = vmatpush.msra.mxu1 %v43_v33  ;;  %112 = vmatpush.msra.mxu0 %v38_v36  ;;  %v22_v52 = vld [vmem:[%s736_s1] sm:$0xff]  ;;  %v231_v55 = vld [vmem:[%s738_s3 + $0x170] sm:$0xff]  ;;  %v216_v57 = vld [vmem:[%s738_s3 + $0xf8] sm:$0xff] }
  0x14   :  { %153 = vmatpush.msra.mxu2 %v36_v34  ;;  %173 = vmatpush.msra.mxu3 %v37_v35  ;;  %v199_v56 = vld [vmem:[%s738_s3 + $0x70] sm:$0xff]  ;;  %v234_v58 = vld [vmem:[%s738_s3 + $0x188] sm:$0xff] }
  0x15   :  { %132 = vmatpush.msra.mxu1 %v39_v37  ;;  %113 = vmatpush.msra.mxu0 %v34_v40  ;;  %v230_v59 = vld [vmem:[%s738_s3 + $0x168] sm:$0xff] }
  0x16   :  { %154 = vmatpush.msra.mxu2 %v32_v38  ;;  %174 = vmatpush.msra.mxu3 %v33_v39 }
  0x17   :  { %133 = vmatpush.msra.mxu1 %v35_v41  ;;  %114 = vmatpush.msra.mxu0 %v30_v44 }
  0x18   :  { %155 = vmatpush.msra.mxu2 %v28_v42  ;;  %175 = vmatpush.msra.mxu3 %v29_v43 }
  0x19   :  { %134 = vmatpush.msra.mxu1 %v31_v45  ;;  %115 = vmatpush.msra.mxu0 %v26_v49 }
  0x1a   :  { %156 = vmatpush.msra.mxu2 %v24_v46  ;;  %176 = vmatpush.msra.mxu3 %v25_v47 }
  0x1b   :  { %345 = vmatmul.msk.f32.vlgmr.msra.gmra.mxu2 %vm84_vm1, %v21_v48  ;;  %347 = vmatmul.msk.f32.vlgmr.msra.gmra.mxu3 %vm84_vm1, %v21_v48 }
  0x1c   :  { %135 = vmatpush.msra.mxu1 %v27_v50  ;;  %283 = vmatpush.msrb.mxu2 %v232_v51 }
  0x1d   :  { %116 = vmatpush.msra.mxu0 %v22_v52 }
  0x1e   :  { %136 = vmatpush.msra.mxu1 %v23_v53  ;;  %341 = vmatmul.msk.f32.vlgmr.msra.gmra.mxu0 %vm84_vm1, %v21_v48 }
  0x1f   :  { %343 = vmatmul.msk.f32.vlgmr.msra.gmra.mxu1 %vm84_vm1, %v21_v48 }
  0x20   :  { %10 = vsyncpa [#allocation3], 0  ;;  %243 = vmatpush.msrb.mxu0 %v200_v54  ;;  %284 = vmatpush.msrb.mxu2 %v231_v55  ;;  %v215_v60 = vld [vmem:[%s738_s3 + $0xf0] sm:$0xff]  ;;  %v198_v61 = vld [vmem:[%s738_s3 + $0x68] sm:$0xff]  ;;  %vm239_vm2 = vcmask 130048   ;;  %s377_s18 = smov [#allocation2]  }
  0x21   :  { %263 = vmatpush.msrb.mxu1 %v216_v57  ;;  %v229_v62 = vld [vmem:[%s738_s3 + $0x160] sm:$0xff]  ;;  %317 = vmatpush.msrb.mxu3 %v234_v58  ;;  %v214_v63 = vld [vmem:[%s738_s3 + $0xe8] sm:$0xff]  ;;  %v228_v1 = vld [vmem:[%s738_s3 + $0x158] sm:$0xff]  ;;  %s329_s19 = sshll.u32 %s377_s18, 4  ;;  %s331_s0 = sshll.u32 %s740_s5, 4  ;;  %s330_s19 = int_to_ptr.vmem [resolvable:$true] %s329_s19  ;;  %s332_s0 = int_to_ptr.hbm [resolvable:$true] %s331_s0 }
  0x22   :  { %244 = vmatpush.msrb.mxu0 %v199_v56  ;;  %285 = vmatpush.msrb.mxu2 %v230_v59  ;;  %v197_v0 = vld [vmem:[%s738_s3 + $0x60] sm:$0xff]  ;;  %v196_v3 = vld [vmem:[%s738_s3 + $0x58] sm:$0xff]  ;;  %v227_v4 = vld [vmem:[%s738_s3 + $0x150] sm:$0xff] }
  0x23   :  { %264 = vmatpush.msrb.mxu1 %v215_v60  ;;  %v213_v2 = vld [vmem:[%s738_s3 + $0xe0] sm:$0xff]  ;;  %v212_v5 = vld [vmem:[%s738_s3 + $0xd8] sm:$0xff]  ;;  %v195_v6 = vld [vmem:[%s738_s3 + $0x50] sm:$0xff] }
  0x24   :  { %245 = vmatpush.msrb.mxu0 %v198_v61  ;;  %286 = vmatpush.msrb.mxu2 %v229_v62  ;;  %v226_v7 = vld [vmem:[%s738_s3 + $0x148] sm:$0xff]  ;;  %v211_v8 = vld [vmem:[%s738_s3 + $0xd0] sm:$0xff]  ;;  %v225_v10 = vld [vmem:[%s738_s3 + $0x140] sm:$0xff] }
  0x25   :  { %265 = vmatpush.msrb.mxu1 %v214_v63  ;;  %v194_v9 = vld [vmem:[%s738_s3 + $0x48] sm:$0xff]  ;;  %v193_v12 = vld [vmem:[%s738_s3 + $0x40] sm:$0xff]  ;;  %v224_v13 = vld [vmem:[%s738_s3 + $0x138] sm:$0xff] }
  0x26   :  { %246 = vmatpush.msrb.mxu0 %v197_v0  ;;  %287 = vmatpush.msrb.mxu2 %v228_v1  ;;  %v210_v11 = vld [vmem:[%s738_s3 + $0xc8] sm:$0xff]  ;;  %v209_v14 = vld [vmem:[%s738_s3 + $0xc0] sm:$0xff]  ;;  %v192_v15 = vld [vmem:[%s738_s3 + $0x38] sm:$0xff] }
  0x27   :  { %266 = vmatpush.msrb.mxu1 %v213_v2  ;;  %v223_v16 = vld [vmem:[%s738_s3 + $0x130] sm:$0xff]  ;;  %v208_v17 = vld [vmem:[%s738_s3 + $0xb8] sm:$0xff]  ;;  %v222_v19 = vld [vmem:[%s738_s3 + $0x128] sm:$0xff] }
  0x28   :  { %247 = vmatpush.msrb.mxu0 %v196_v3  ;;  %288 = vmatpush.msrb.mxu2 %v227_v4  ;;  %v191_v18 = vld [vmem:[%s738_s3 + $0x30] sm:$0xff]  ;;  %v190_v21 = vld [vmem:[%s738_s3 + $0x28] sm:$0xff]  ;;  %v221_v22 = vld [vmem:[%s738_s3 + $0x120] sm:$0xff] }
  0x29   :  { %267 = vmatpush.msrb.mxu1 %v212_v5  ;;  %v207_v20 = vld [vmem:[%s738_s3 + $0xb0] sm:$0xff]  ;;  %v206_v23 = vld [vmem:[%s738_s3 + $0xa8] sm:$0xff]  ;;  %v189_v24 = vld [vmem:[%s738_s3 + $0x20] sm:$0xff] }
  0x2a   :  { %248 = vmatpush.msrb.mxu0 %v195_v6  ;;  %289 = vmatpush.msrb.mxu2 %v226_v7  ;;  %v220_v25 = vld [vmem:[%s738_s3 + $0x118] sm:$0xff]  ;;  %v205_v27 = vld [vmem:[%s738_s3 + $0xa0] sm:$0xff]  ;;  %v219_v28 = vld [vmem:[%s738_s3 + $0x110] sm:$0xff] }
  0x2b   :  { %268 = vmatpush.msrb.mxu1 %v211_v8  ;;  %v188_v26 = vld [vmem:[%s738_s3 + $0x18] sm:$0xff]  ;;  %v187_v29 = vld [vmem:[%s738_s3 + $0x10] sm:$0xff]  ;;  %v218_v31 = vld [vmem:[%s738_s3 + $0x108] sm:$0xff] }
  0x2c   :  { %249 = vmatpush.msrb.mxu0 %v194_v9  ;;  %290 = vmatpush.msrb.mxu2 %v225_v10  ;;  %v204_v30 = vld [vmem:[%s738_s3 + $0x98] sm:$0xff]  ;;  %v233_v32 = vld [vmem:[%s738_s3 + $0x180] sm:$0xff]  ;;  %v186_v33 = vld [vmem:[%s738_s3 + $0x8] sm:$0xff] }
  0x2d   :  { %269 = vmatpush.msrb.mxu1 %v210_v11  ;;  %v203_v34 = vld [vmem:[%s738_s3 + $0x90] sm:$0xff]  ;;  %318 = vmatpush.msrb.mxu3 %v233_v32  ;;  %v217_v35 = vld [vmem:[%s738_s3 + $0x100] sm:$0xff]  ;;  %v202_v37 = vld [vmem:[%s738_s3 + $0x88] sm:$0xff] }
  0x2e   :  { %250 = vmatpush.msrb.mxu0 %v193_v12  ;;  %291 = vmatpush.msrb.mxu2 %v224_v13  ;;  %v185_v36 = vld [vmem:[%s738_s3] sm:$0xff] }
  0x2f   :  { %270 = vmatpush.msrb.mxu1 %v209_v14  ;;  %v201_v38 = vld [vmem:[%s738_s3 + $0x80] sm:$0xff] }
  0x30   :  { %251 = vmatpush.msrb.mxu0 %v192_v15  ;;  %292 = vmatpush.msrb.mxu2 %v223_v16  ;;  %v74_v39 = vld [vmem:[%s737_s2] sm:$0xf] }
  0x31   :  { %271 = vmatpush.msrb.mxu1 %v208_v17  ;;  %v76_v40 = vperm.slane %v74_v39, 0  ;;  %v77_v41 = vperm.slane %v74_v39, 1  ;;  %v78_v42 = vperm.slane %v74_v39, 2  ;;  %v79_v43 = vperm.slane %v74_v39, 3  ;;  %v350_v56 = vld [vmem:[%s739_s4] ss:$0 sm:$0xff] }
  0x32   :  { %252 = vmatpush.msrb.mxu0 %v191_v18  ;;  %293 = vmatpush.msrb.mxu2 %v222_v19 }
  0x33   :  { %272 = vmatpush.msrb.mxu1 %v207_v20 }
  0x34   :  { %253 = vmatpush.msrb.mxu0 %v190_v21  ;;  %294 = vmatpush.msrb.mxu2 %v221_v22 }
  0x35   :  { %273 = vmatpush.msrb.mxu1 %v206_v23 }
  0x36   :  { %254 = vmatpush.msrb.mxu0 %v189_v24  ;;  %295 = vmatpush.msrb.mxu2 %v220_v25 }
  0x37   :  { %274 = vmatpush.msrb.mxu1 %v205_v27 }
  0x38   :  { %255 = vmatpush.msrb.mxu0 %v188_v26  ;;  %296 = vmatpush.msrb.mxu2 %v219_v28 }
  0x39   :  { %275 = vmatpush.msrb.mxu1 %v204_v30 }
  0x3a   :  { %256 = vmatpush.msrb.mxu0 %v187_v29  ;;  %297 = vmatpush.msrb.mxu2 %v218_v31 }
  0x3b   :  { %276 = vmatpush.msrb.mxu1 %v203_v34 }
  0x3c   :  { %257 = vmatpush.msrb.mxu0 %v186_v33  ;;  %298 = vmatpush.msrb.mxu2 %v217_v35 }
  0x3d   :  { %277 = vmatpush.msrb.mxu1 %v202_v37 }
  0x3e   :  { %258 = vmatpush.msrb.mxu0 %v185_v36 }
  0x3f   :  { %278 = vmatpush.msrb.mxu1 %v201_v38 }
  0x9b   :  { %v118_v44 = vpop.f32.mrf.mxu0 }
  0x9c   :  { %v138_v45 = vpop.f32.mrf.mxu1  ;;  %v119_v46 = vadd.f32 %v118_v44, %v76_v40 }
  0x9d   :  { %v139_v47 = vadd.f32 %v138_v45, %v77_v41 }
  0x9e   :  { %v158_v48 = vpop.f32.mrf.mxu2  ;;  %v178_v49 = vpop.f32.mrf.mxu3  ;;  %v181_v51 = vmax.f32 %v119_v46, 0.0 }
  0x9f   :  { %v159_v50 = vadd.f32 %v158_v48, %v78_v42  ;;  %v179_v52 = vadd.f32 %v178_v49, %v79_v43  ;;  %v182_v53 = vmax.f32 %v139_v47, 0.0 }
  0xa0   :  { %259 = vmatmul.f32.vlgmr.msrb.gmra.mxu0 %v181_v51 }
  0xa1   :  { %v183_v54 = vmax.f32 %v159_v50, 0.0  ;;  %v184_v55 = vmax.f32 %v179_v52, 0.0  ;;  %279 = vmatmul.f32.vlgmr.msrb.gmra.mxu1 %v182_v53 }
  0xa3   :  { %299 = vmatmul.f32.vlgmr.msrb.gmra.mxu2 %v183_v54  ;;  %348 = vmatmul.msk.f32.vlgmr.msrb.gmra.mxu3 %vm239_vm2, %v184_v55 }
 0x11d   :  { %v260_v57 = vpop.f32.mrf.mxu0 }
 0x11e   :  { %v261_v58 = vadd.f32 %v350_v56, %v260_v57  ;;  %v280_v59 = vpop.f32.mrf.mxu1 }
 0x120   :  { %v281_v60 = vadd.f32 %v280_v59, %v261_v58 }
 0x126   :  { %v300_v61 = vpop.f32.mrf.mxu2  ;;  %v320_v62 = vpop.f32.mrf.mxu3 }
 0x127   :  { %v301_v63 = vadd.f32 %v300_v61, %v281_v60 }
 0x129   :  { %v321_v0 = vadd.f32 %v320_v62, %v301_v63 }
 0x12b   :  { %323 = vst.msk [vmem:[#allocation2] sm:$0xff] %vm84_vm1, %v321_v0 }
 0x12c   :  { %334 = dma.vmem_to_hbm [thread:$0]  %s330_s19, 128, %s332_s0, [#allocation3]  }
 0x12d   :  { %375 = dma.done.wait [#allocation3], 128  }
 0x12e   :  { %376 = vsyncadd [#allocation3], 4294967168 }
 0x12f   :  { %339 = vsyncpa [#allocation3], 1 }

</bundles_post_ra>
